<compile_context>
chip_gen: v6e
topology: v6e:2x2x1
jax: 0.10.0
libtpu: 0.0.40
codegen_flags: <defaults>
</compile_context>

<pallas_src>
import numpy as np
import jax
import jax.numpy as jnp
from jax.experimental import pallas as pl
from jax.experimental.pallas import tpu as pltpu

N_QUBITS = 4
DEPTH = 4
DIM = 1 << N_QUBITS            # 16 basis states
LANE = 128                     # batch rides the 128-lane axis
MAX_TILE_B = 32768             # 2 MiB of f32 I/O per grid step, ~12 MiB live VMEM
MIN_SPLIT_B = 8192             # batches >= 2*this get >= 2 grid steps (v7x, 2 TCs)
VMEM_LIMIT_BYTES = 32 * 1024 * 1024


# ----------------------------- Pallas kernel --------------------------------
def quantum_layer_kernel(x_ref, u_ref, zt_ref, o_ref):
    """x:(nq, TB) lane-major input, u:(16,16) variational unitary,
    zt:(nq,16) Pauli-Z sign rows, o:(nq, TB).  Batch lives on the lane axis."""
    x = x_ref[...].astype(jnp.float32)                        # (nq, TB)
    tb = x.shape[1]
    qpi = np.float32(np.pi / 4.0)

    # Encoding: theta = tanh(x)*pi/2 after H.  Amplitudes of RY(theta) H |0>:
    #   a0 = cos(pi/4 + tanh(x)*pi/4),  a1 = cos(pi/4 - tanh(x)*pi/4).
    # tanh is odd, so packing [x, -x] lets tanh and cos each run as ONE
    # full-height (8, TB) EUP pass (rows 0-3 -> a0_q, rows 4-7 -> a1_q).
    x8 = jnp.concatenate([x, -x], axis=0)                     # (8, TB)
    cs = jnp.cos(jnp.tanh(x8) * qpi + qpi)                    # (8, TB)

    # Product state (little-endian: bit q of basis index i = value of qubit q):
    #   state[i] = prod_q (a1_q if bit_q(i) else a0_q)
    # 4 selects of sublane-broadcast rows against constant (16,1) bit masks,
    # then 3 full-(16, TB) multiplies.  No 1-row sublane concatenations.
    basis = jax.lax.broadcasted_iota(jnp.int32, (DIM, 1), 0)  # (16, 1)

    def qubit_factor(q):
        a0 = jnp.broadcast_to(cs[q:q + 1], (DIM, tb))
        a1 = jnp.broadcast_to(cs[q + 4:q + 5], (DIM, tb))
        bit = jnp.broadcast_to(((basis >> q) & 1) == 1, (DIM, tb))
        return jnp.where(bit, a1, a0)                          # (16, TB)

    state = (qubit_factor(0) * qubit_factor(1) *
             qubit_factor(2) * qubit_factor(3))                 # (16, TB)

    # Variational circuit: psi <- U @ psi  (real 16x16 unitary, MXU N = TB),
    # then Pauli-Z expectations from probabilities (second MXU matmul).
    state = jnp.dot(u_ref[...], state, preferred_element_type=jnp.float32)
    probs = state * state
    o_ref[...] = jnp.dot(zt_ref[...], probs, preferred_element_type=jnp.float32)


# ------------------------------- wrappers ------------------------------------
def _batch_tiling(batch, max_tile_b=MAX_TILE_B):
    """Lane-aligned batch tile with bounded pad waste (< n_tiles*128 elements)
    and >= 2 grid steps for large batches (so both v7x TensorCores get work)."""
    b128 = pl.cdiv(batch, LANE) * LANE
    n_tiles = pl.cdiv(b128, max_tile_b)
    if b128 >= 2 * MIN_SPLIT_B:
        n_tiles = max(n_tiles, 2)
    tile_b = pl.cdiv(pl.cdiv(b128, n_tiles), LANE) * LANE
    return tile_b, tile_b * n_tiles


def quantum_layer_fwd_lanes(x_t, u, zobs_t, *, max_tile_b=MAX_TILE_B):
    """Preferred interface: x_t is lane-major (nq, B); returns (nq, B).
    No wrapper-side pad/transpose HBM passes when B is a multiple of the tile."""
    nq, batch = x_t.shape
    tile_b, b_pad = _batch_tiling(batch, max_tile_b)

    x_t = x_t.astype(jnp.float32)
    if b_pad != batch:                        # only copies when the batch is ragged
        x_t = jnp.pad(x_t, ((0, 0), (0, b_pad - batch)))

    cost = pl.CostEstimate(
        flops=2 * b_pad * (DIM * DIM + DIM * nq + 3 * DIM),
        transcendentals=2 * 8 * b_pad,                        # packed tanh + cos
        bytes_accessed=4 * (2 * b_pad * nq + DIM * DIM + nq * DIM))

    out_t = pl.pallas_call(
        quantum_layer_kernel,
        out_shape=jax.ShapeDtypeStruct((nq, b_pad), jnp.float32),
        grid=(b_pad // tile_b,),
        in_specs=[
            pl.BlockSpec((nq, tile_b), lambda i: (0, i)),      # batch-tiled input
            pl.BlockSpec((DIM, DIM), lambda i: (0, 0)),        # U resident in VMEM
            pl.BlockSpec((nq, DIM), lambda i: (0, 0)),         # Z rows resident
        ],
        out_specs=pl.BlockSpec((nq, tile_b), lambda i: (0, i)),
        compiler_params=pltpu.CompilerParams(
            dimension_semantics=("parallel",),                 # 2-TC sharding on v7x
            vmem_limit_bytes=VMEM_LIMIT_BYTES),
        cost_estimate=cost,
    )(x_t, u, zobs_t)

    return out_t if b_pad == batch else out_t[:, :batch]


def quantum_layer_fwd(x, u, zobs_t, *, max_tile_b=MAX_TILE_B):
    """Drop-in (B, nq) -> (B, nq) interface matching the PyTorch module.
    Costs one transpose HBM pass each way; plumb the lane-major layout
    (quantum_layer_fwd_lanes) through the surrounding model to avoid it."""
    return quantum_layer_fwd_lanes(x.T, u, zobs_t, max_tile_b=max_tile_b).T


# ------------------- parameter setup (input-independent glue) ---------------
# TODO(synk): Qiskit circuit construction / EstimatorQNN / TorchConnector have
# no Pallas equivalent; the trained weights are compiled offline into a dense
# real 16x16 unitary below, exactly like any other layer weight.
def cnot_matrix(control, target, n=N_QUBITS):
    idx = np.arange(1 << n)
    flipped = np.where(((idx >> control) & 1) == 1, idx ^ (1 << target), idx)
    m = np.zeros((1 << n, 1 << n), np.float64)
    m[flipped, idx] = 1.0
    return m


def entangling_matrix(n=N_QUBITS):
    e = np.eye(1 << n, dtype=np.float64)
    for i in range(0, n - 1, 2):          # cx(0,1), cx(2,3), ...
        e = cnot_matrix(i, i + 1, n) @ e
    for i in range(1, n - 1, 2):          # cx(1,2), ...
        e = cnot_matrix(i, i + 1, n) @ e
    return e


def ry_layer_matrix(thetas, n=N_QUBITS):
    """Tensor product of per-qubit RY rotations (little-endian qubit order)."""
    thetas = np.asarray(thetas, np.float64)
    c = np.cos(thetas / 2.0)
    s = np.sin(thetas / 2.0)
    idx = np.arange(1 << n)
    m = np.ones((1 << n, 1 << n), np.float64)
    for q in range(n):
        bq = (idx >> q) & 1
        rq = np.array([[c[q], -s[q]], [s[q], c[q]]], np.float64)
        m = m * rq[bq[:, None], bq[None, :]]
    return m


def build_variational_unitary(var_params, n=N_QUBITS, depth=DEPTH):
    e = entangling_matrix(n)
    u = np.eye(1 << n, dtype=np.float64)
    for layer in range(depth):
        u = e @ u
        u = ry_layer_matrix(var_params[layer * n:(layer + 1) * n], n) @ u
    return u                                              # float64; cast by caller


def z_observable_rows(n=N_QUBITS):
    """Row i = eigenvalues of Z acting on qubit (n-1-i), matching SparsePauliOp
    built from a python list where list index i is 'Z'."""
    idx = np.arange(1 << n)
    z = np.zeros((n, 1 << n), np.float32)
    for i in range(n):
        qubit = n - 1 - i
        z[i, :] = 1.0 - 2.0 * ((idx >> qubit) & 1)
    return z


# --------------------------- pure-numpy reference ----------------------------
def reference_forward(x_np, var_params, n=N_QUBITS):
    u = build_variational_unitary(var_params, n)
    ang = np.tanh(x_np.astype(np.float64)) * np.pi / 2.0
    c = np.cos(ang / 2.0)
    s = np.sin(ang / 2.0)
    a0 = (c - s) / np.sqrt(2.0)
    a1 = (c + s) / np.sqrt(2.0)
    idx = np.arange(1 << n)
    out = np.zeros((x_np.shape[0], n), np.float64)
    for b in range(x_np.shape[0]):
        state = np.ones(1 << n, np.float64)
        for q in range(n):
            bit = (idx >> q) & 1
            state = state * np.where(bit == 1, a1[b, q], a0[b, q])
        state = u @ state
        probs = state * state
        for i in range(n):
            qb = n - 1 - i
            out[b, i] = np.sum(probs * (1.0 - 2.0 * ((idx >> qb) & 1)))
    return out


# ---------------------------------- main -------------------------------------
if __name__ == "__main__":
    key = jax.random.PRNGKey(0)
    kx, kw, kx2 = jax.random.split(key, 3)

    # deterministic "trained" variational weights (TorchConnector-style init)
    var_params = np.asarray(
        jax.random.uniform(kw, (DEPTH * N_QUBITS,), jnp.float32,
                           minval=-np.pi, maxval=np.pi))
    u = jnp.asarray(build_variational_unitary(var_params).astype(np.float32))   # (16,16)
    zobs_t = jnp.asarray(z_observable_rows())                                   # (4,16)

    # 1) small batch through the (B, nq) drop-in interface (matches the module)
    B = 8
    x = jax.random.normal(kx, (B, N_QUBITS), dtype=jnp.float32)
    out = quantum_layer_fwd(x, u, zobs_t)
    jax.block_until_ready(out)
    assert out.shape == (B, N_QUBITS)
    ref = reference_forward(np.asarray(x), var_params)
    assert np.allclose(np.asarray(out), ref, atol=2e-4), "kernel/reference mismatch"

    # 2) multi-tile + ragged-batch check through the lane-major interface
    #    (forces 3 grid steps with tile_b=128 and exercises the pad/slice path)
    B2 = 300
    x2 = jax.random.normal(kx2, (B2, N_QUBITS), dtype=jnp.float32)
    out2_t = quantum_layer_fwd_lanes(x2.T, u, zobs_t, max_tile_b=128)
    jax.block_until_ready(out2_t)
    assert out2_t.shape == (N_QUBITS, B2)
    ref2 = reference_forward(np.asarray(x2), var_params)
    assert np.allclose(np.asarray(out2_t).T, ref2, atol=2e-4), "multi-tile mismatch"

    print("KERNEL_OK")
</pallas_src>

<mosaic_0001>
module attributes {stable_mosaic.version = 11 : i64} {
  func.func @quantum_layer_kernel(%arg0: i32, %arg1: memref<4x128xf32, #tpu.memory_space<vmem>>, %arg2: memref<16x16xf32, #tpu.memory_space<vmem>>, %arg3: memref<4x16xf32, #tpu.memory_space<vmem>>, %arg4: memref<4x128xf32, #tpu.memory_space<vmem>>) attributes {dimension_semantics = [#tpu.dimension_semantics<parallel>], iteration_bounds = array<i64: 1>, scalar_prefetch = 0 : i64, scratch_operands = 0 : i64, tpu.core_type = #tpu.core_type<tc>, window_params = [{transform_indices = @transform_0, window_bounds = array<i64: 4, 128>}, {pipeline_mode = #tpu.pipeline_mode<synchronous>, transform_indices = @transform_1, window_bounds = array<i64: 16, 16>}, {pipeline_mode = #tpu.pipeline_mode<synchronous>, transform_indices = @transform_2, window_bounds = array<i64: 4, 16>}, {transform_indices = @transform_3, window_bounds = array<i64: 4, 128>}]} {
    %c0 = arith.constant 0 : index
    %c0_0 = arith.constant 0 : index
    %0 = vector.load %arg1[%c0, %c0_0] : memref<4x128xf32, #tpu.memory_space<vmem>>, vector<4x128xf32>
    %cst = arith.constant 0.000000e+00 : f32
    %1 = vector.broadcast %cst : f32 to vector<4x128xf32>
    %2 = arith.subf %1, %0 : vector<4x128xf32>
    %3 = tpu.concatenate %0, %2 in 0 : vector<4x128xf32>, vector<4x128xf32> -> vector<8x128xf32>
    %4 = math.tanh %3 : vector<8x128xf32>
    %cst_1 = arith.constant 0.785398185 : f32
    %5 = vector.broadcast %cst_1 : f32 to vector<8x128xf32>
    %6 = arith.mulf %4, %5 : vector<8x128xf32>
    %cst_2 = arith.constant 0.785398185 : f32
    %7 = vector.broadcast %cst_2 : f32 to vector<8x128xf32>
    %8 = arith.addf %6, %7 : vector<8x128xf32>
    %9 = math.cos %8 : vector<8x128xf32>
    %10 = tpu.iota {dimensions = array<i32: 0>} : vector<16x1xi32>
    %11 = vector.extract_strided_slice %9 {offsets = [0, 0], sizes = [1, 128], strides = [1, 1]} : vector<8x128xf32> to vector<1x128xf32>
    %12 = vector.shape_cast %11 : vector<1x128xf32> to vector<1x128xf32>
    %13 = vector.broadcast %12 : vector<1x128xf32> to vector<16x128xf32>
    %14 = vector.extract_strided_slice %9 {offsets = [4, 0], sizes = [1, 128], strides = [1, 1]} : vector<8x128xf32> to vector<1x128xf32>
    %15 = vector.shape_cast %14 : vector<1x128xf32> to vector<1x128xf32>
    %16 = vector.broadcast %15 : vector<1x128xf32> to vector<16x128xf32>
    %c0_i32 = arith.constant 0 : i32
    %17 = vector.broadcast %c0_i32 : i32 to vector<16x1xi32>
    %18 = arith.shrsi %10, %17 : vector<16x1xi32>
    %c1_i32 = arith.constant 1 : i32
    %19 = vector.broadcast %c1_i32 : i32 to vector<16x1xi32>
    %20 = arith.andi %18, %19 : vector<16x1xi32>
    %c1_i32_3 = arith.constant 1 : i32
    %21 = vector.broadcast %c1_i32_3 : i32 to vector<16x1xi32>
    %22 = arith.cmpi eq, %20, %21 : vector<16x1xi32>
    %23 = vector.shape_cast %22 : vector<16x1xi1> to vector<16x1xi1>
    %24 = vector.broadcast %23 : vector<16x1xi1> to vector<16x128xi1>
    %25 = arith.select %24, %16, %13 : vector<16x128xi1>, vector<16x128xf32>
    %26 = vector.extract_strided_slice %9 {offsets = [1, 0], sizes = [1, 128], strides = [1, 1]} : vector<8x128xf32> to vector<1x128xf32>
    %27 = vector.shape_cast %26 : vector<1x128xf32> to vector<1x128xf32>
    %28 = vector.broadcast %27 : vector<1x128xf32> to vector<16x128xf32>
    %29 = vector.extract_strided_slice %9 {offsets = [5, 0], sizes = [1, 128], strides = [1, 1]} : vector<8x128xf32> to vector<1x128xf32>
    %30 = vector.shape_cast %29 : vector<1x128xf32> to vector<1x128xf32>
    %31 = vector.broadcast %30 : vector<1x128xf32> to vector<16x128xf32>
    %c1_i32_4 = arith.constant 1 : i32
    %32 = vector.broadcast %c1_i32_4 : i32 to vector<16x1xi32>
    %33 = arith.shrsi %10, %32 : vector<16x1xi32>
    %c1_i32_5 = arith.constant 1 : i32
    %34 = vector.broadcast %c1_i32_5 : i32 to vector<16x1xi32>
    %35 = arith.andi %33, %34 : vector<16x1xi32>
    %c1_i32_6 = arith.constant 1 : i32
    %36 = vector.broadcast %c1_i32_6 : i32 to vector<16x1xi32>
    %37 = arith.cmpi eq, %35, %36 : vector<16x1xi32>
    %38 = vector.shape_cast %37 : vector<16x1xi1> to vector<16x1xi1>
    %39 = vector.broadcast %38 : vector<16x1xi1> to vector<16x128xi1>
    %40 = arith.select %39, %31, %28 : vector<16x128xi1>, vector<16x128xf32>
    %41 = arith.mulf %25, %40 : vector<16x128xf32>
    %42 = vector.extract_strided_slice %9 {offsets = [2, 0], sizes = [1, 128], strides = [1, 1]} : vector<8x128xf32> to vector<1x128xf32>
    %43 = vector.shape_cast %42 : vector<1x128xf32> to vector<1x128xf32>
    %44 = vector.broadcast %43 : vector<1x128xf32> to vector<16x128xf32>
    %45 = vector.extract_strided_slice %9 {offsets = [6, 0], sizes = [1, 128], strides = [1, 1]} : vector<8x128xf32> to vector<1x128xf32>
    %46 = vector.shape_cast %45 : vector<1x128xf32> to vector<1x128xf32>
    %47 = vector.broadcast %46 : vector<1x128xf32> to vector<16x128xf32>
    %c2_i32 = arith.constant 2 : i32
    %48 = vector.broadcast %c2_i32 : i32 to vector<16x1xi32>
    %49 = arith.shrsi %10, %48 : vector<16x1xi32>
    %c1_i32_7 = arith.constant 1 : i32
    %50 = vector.broadcast %c1_i32_7 : i32 to vector<16x1xi32>
    %51 = arith.andi %49, %50 : vector<16x1xi32>
    %c1_i32_8 = arith.constant 1 : i32
    %52 = vector.broadcast %c1_i32_8 : i32 to vector<16x1xi32>
    %53 = arith.cmpi eq, %51, %52 : vector<16x1xi32>
    %54 = vector.shape_cast %53 : vector<16x1xi1> to vector<16x1xi1>
    %55 = vector.broadcast %54 : vector<16x1xi1> to vector<16x128xi1>
    %56 = arith.select %55, %47, %44 : vector<16x128xi1>, vector<16x128xf32>
    %57 = arith.mulf %41, %56 : vector<16x128xf32>
    %58 = vector.extract_strided_slice %9 {offsets = [3, 0], sizes = [1, 128], strides = [1, 1]} : vector<8x128xf32> to vector<1x128xf32>
    %59 = vector.shape_cast %58 : vector<1x128xf32> to vector<1x128xf32>
    %60 = vector.broadcast %59 : vector<1x128xf32> to vector<16x128xf32>
    %61 = vector.extract_strided_slice %9 {offsets = [7, 0], sizes = [1, 128], strides = [1, 1]} : vector<8x128xf32> to vector<1x128xf32>
    %62 = vector.shape_cast %61 : vector<1x128xf32> to vector<1x128xf32>
    %63 = vector.broadcast %62 : vector<1x128xf32> to vector<16x128xf32>
    %c3_i32 = arith.constant 3 : i32
    %64 = vector.broadcast %c3_i32 : i32 to vector<16x1xi32>
    %65 = arith.shrsi %10, %64 : vector<16x1xi32>
    %c1_i32_9 = arith.constant 1 : i32
    %66 = vector.broadcast %c1_i32_9 : i32 to vector<16x1xi32>
    %67 = arith.andi %65, %66 : vector<16x1xi32>
    %c1_i32_10 = arith.constant 1 : i32
    %68 = vector.broadcast %c1_i32_10 : i32 to vector<16x1xi32>
    %69 = arith.cmpi eq, %67, %68 : vector<16x1xi32>
    %70 = vector.shape_cast %69 : vector<16x1xi1> to vector<16x1xi1>
    %71 = vector.broadcast %70 : vector<16x1xi1> to vector<16x128xi1>
    %72 = arith.select %71, %63, %60 : vector<16x128xi1>, vector<16x128xf32>
    %73 = arith.mulf %57, %72 : vector<16x128xf32>
    %c0_11 = arith.constant 0 : index
    %c0_12 = arith.constant 0 : index
    %74 = vector.load %arg2[%c0_11, %c0_12] : memref<16x16xf32, #tpu.memory_space<vmem>>, vector<16x16xf32>
    %cst_13 = arith.constant dense<0.000000e+00> : vector<16x128xf32>
    %75 = tpu.matmul %74, %73, %cst_13 {dimension_numbers = #tpu.dot_dimension_numbers<[1], [0], [0], [1], [0, 0, 1, 1], [], []>} : vector<16x16xf32>, vector<16x128xf32>, vector<16x128xf32> -> vector<16x128xf32>
    %76 = arith.mulf %75, %75 : vector<16x128xf32>
    %c0_14 = arith.constant 0 : index
    %c0_15 = arith.constant 0 : index
    %77 = vector.load %arg3[%c0_14, %c0_15] : memref<4x16xf32, #tpu.memory_space<vmem>>, vector<4x16xf32>
    %cst_16 = arith.constant dense<0.000000e+00> : vector<4x128xf32>
    %78 = tpu.matmul %77, %76, %cst_16 {dimension_numbers = #tpu.dot_dimension_numbers<[1], [0], [0], [1], [0, 0, 1, 1], [], []>} : vector<4x16xf32>, vector<16x128xf32>, vector<4x128xf32> -> vector<4x128xf32>
    %c0_17 = arith.constant 0 : index
    %c0_18 = arith.constant 0 : index
    %79 = vector.load %arg4[%c0_17, %c0_18] : memref<4x128xf32, #tpu.memory_space<vmem>>, vector<4x128xf32>
    tpu.vector_store %arg4[%c0_17, %c0_18], %78 {strides = array<i32>} : memref<4x128xf32, #tpu.memory_space<vmem>>, vector<4x128xf32>,
    return
  }
  func.func @transform_0(%arg0: i32) -> (i32, i32) {
    %c0_i32 = arith.constant 0 : i32
    %c0_i32_0 = arith.constant 0 : i32
    return %c0_i32, %arg0 : i32, i32
  }
  func.func @transform_1(%arg0: i32) -> (i32, i32) {
    %c0_i32 = arith.constant 0 : i32
    %c0_i32_0 = arith.constant 0 : i32
    %c0_i32_1 = arith.constant 0 : i32
    return %c0_i32, %c0_i32_0 : i32, i32
  }
  func.func @transform_2(%arg0: i32) -> (i32, i32) {
    %c0_i32 = arith.constant 0 : i32
    %c0_i32_0 = arith.constant 0 : i32
    %c0_i32_1 = arith.constant 0 : i32
    return %c0_i32, %c0_i32_0 : i32, i32
  }
  func.func @transform_3(%arg0: i32) -> (i32, i32) {
    %c0_i32 = arith.constant 0 : i32
    %c0_i32_0 = arith.constant 0 : i32
    return %c0_i32, %arg0 : i32, i32
  }
}

</mosaic_0001>

<bundles_post_ra>
// kernel: tpu_custom_call.1
= control target key start
LH: loop header
LB: loop body
LE: loop exit
PB: predicated region body
PF: predicated region fallthrough
CT: control target
= control target key end

     0   :  { %8 = vsyncpa [#allocation3], 0  ;;  %s654_s0 = inlined_call_operand.hbm [shape: f32[4,128], index: 0, kind: input, shape index: {}]   ;;  %s655_s1 = inlined_call_operand.hbm [shape: f32[16,16], index: 1, kind: input, shape index: {}]   ;;  %s656_s2 = inlined_call_operand.hbm [shape: f32[4,16], index: 2, kind: input, shape index: {}]   ;;  %s657_s3 = inlined_call_operand.hbm [shape: f32[4,128], index: 3, kind: output, shape index: {}]  }
   0x1   :  { %9 = vsyncpa [#allocation6], 0 }
   0x2   :  { %10 = vsyncpa [#allocation4], 0  ;;  %s567_s12 = smov [#allocation5]  }
   0x3   :  { %s26_s13 = sshll.u32 %s567_s12, 4  ;;  %s27_s13 = int_to_ptr.vmem [resolvable:$true] %s26_s13 }
   0x4   :  { %s489_s14 = scalar_lea.vmem %s27_s13, 256  ;;  %p494_p1 = scmp.lt.s32.totalorder %s27_s13, %s27_s13 }
   0x5   :  { %p490_p0 = scmp.ne.s32.totalorder %s27_s13, %s489_s14  ;;  %p495_p2 = scmp.lt.s32.totalorder %s489_s14, %s489_s14 }
   0x7   :  { %p496_p3 = por %p495_p2, %p494_p1 }
   0x9   :  { %p497_p4 = pnand %p496_p3, %p490_p0 }
   0xb   :  { %500 = shalt.err (!%p497_p4)
}
   0xc   :  { %s568_s15 = smov 128   ;;  %s569_s16 = smov 8  }
   0xd   :  { %32 = dma.hbm_to_vmem [thread:$0]  %s655_s1, 256, %s27_s13, [#allocation6], %s568_s15, %s568_s15, %s569_s16  }
   0xe   :  { %s570_s19 = smov [#allocation2]   ;;  %s571_s21 = smov [#allocation7]  }
   0xf   :  { %s17_s20 = sshll.u32 %s570_s19, 4  ;;  %s39_s22 = sshll.u32 %s571_s21, 4  ;;  %s18_s20 = int_to_ptr.vmem [resolvable:$true] %s17_s20  ;;  %s40_s22 = int_to_ptr.vmem [resolvable:$true] %s39_s22 }
  0x10   :  { %s509_s23 = scalar_lea.vmem %s18_s20, 64  ;;  %p514_p6 = scmp.lt.s32.totalorder %s18_s20, %s18_s20 }
  0x11   :  { %p510_p5 = scmp.ne.s32.totalorder %s18_s20, %s509_s23  ;;  %p515_p7 = scmp.lt.s32.totalorder %s509_s23, %s509_s23 }
  0x13   :  { %p516_p8 = por %p515_p7, %p514_p6 }
  0x15   :  { %p517_p9 = pnand %p516_p8, %p510_p5 }
  0x17   :  { %520 = shalt.err (!%p517_p9)
}
  0x18   :  { %20 = dma.hbm_to_vmem [thread:$0]  %s654_s0, 64, %s18_s20, [#allocation3]  }
  0x19   :  { %s529_s26 = scalar_lea.vmem %s40_s22, 64  ;;  %p534_p11 = scmp.lt.s32.totalorder %s40_s22, %s40_s22 }
  0x1a   :  { %p530_p10 = scmp.ne.s32.totalorder %s40_s22, %s529_s26  ;;  %p535_p12 = scmp.lt.s32.totalorder %s529_s26, %s529_s26 }
  0x1c   :  { %p536_p13 = por %p535_p12, %p534_p11 }
  0x1e   :  { %p537_p0 = pnand %p536_p13, %p530_p10 }
  0x20   :  { %540 = shalt.err (!%p537_p0)
}
  0x21   :  { %42 = dma.hbm_to_vmem [thread:$0]  %s656_s2, 64, %s40_s22, [#allocation6]  }
  0x22   :  { %561 = dma.done.wait [#allocation3], 64  }
  0x23   :  { %562 = vsyncadd [#allocation3], 4294967232 }
  0x24   :  { %563 = dma.done.wait [#allocation6], 320  }
  0x25   :  { %564 = vsyncadd [#allocation6], 4294966976  ;;  %vm254_vm0 = vcmask 130048   ;;  %v52_v0 = vld [vmem:[#allocation2] sm:$0xf]  ;;  %v252_v2 = vld [vmem:[#allocation5] sm:$0xff] }
  0x26   :  { %v53_v1 = vsub.f32 0.0, %v52_v0  ;;  %vm57_vm1 = vcmask 1043456   ;;  %447 = vmatprep.mubr.msk.f32.mxu0 %vm254_vm0, %v252_v2  ;;  %v572_v19 = vmov 683565275   ;;  %v573_v21 = vmov 2475754826  }
  0x27   :  { %v574_v23 = vmov 2131351028   ;;  %v575_v25 = vmov 2102212464   ;;  %v576_v27 = vmov 920167782  }
  0x28   :  { %v55_v3 = vrot.slane %v53_v1, 4  ;;  %v577_v34 = vmov 1326507024   ;;  %s580_s0 = smov [#allocation8]  }
  0x29   :  { %s419_s2 = sshll.u32 %s580_s0, 4  ;;  %s420_s2 = int_to_ptr.vmem [resolvable:$true] %s419_s2 }
  0x2a   :  { %v58_v4 = vsel %vm57_vm1, %v52_v0, %v55_v3  ;;  %s541_s28 = scalar_lea.vmem %s420_s2, 64  ;;  %p546_p2 = scmp.lt.s32.totalorder %s420_s2, %s420_s2 }
  0x2b   :  { %475 = vtanh.f32 %v58_v4  ;;  %p542_p1 = scmp.ne.s32.totalorder %s420_s2, %s541_s28  ;;  %p547_p3 = scmp.lt.s32.totalorder %s541_s28, %s541_s28 }
  0x2d   :  { %p548_p4 = por %p547_p3, %p546_p2 }
  0x2f   :  { %p549_p5 = pnand %p548_p4, %p542_p1 }
  0x38   :  { %v476_v5 = vpop.eup %475 }
  0x39   :  { %v60_v6 = vmul.f32 0.7853982, %v476_v5 }
  0x3b   :  { %v611_v7 = vadd.f32 0.7853982, %v60_v6 }
  0x3d   :  { %v65_v8 = vand.u32 2139095040, %v611_v7  ;;  %v62_v10 = vand.u32 2147483647, %v611_v7  ;;  %vm64_vm9 = vcmp.lt.s32.totalorder %v611_v7, 0  ;;  %vm154_vm14 = vweird.f32 %v611_v7 }
  0x3f   :  { %v66_v9 = vshrl.u32 %v65_v8, 23  ;;  %v69_v13 = vand.u32 8388607, %v62_v10  ;;  %vm63_vm10 = vcmp.le.f32.partialorder %v62_v10, 0.7853982 }
  0x41   :  { %v429_v11 = vadd.s32 4294967169, %v66_v9  ;;  %v70_v16 = vor.u32 8388608, %v69_v13 }
  0x43   :  { %v72_v12 = vadd.s32 1, %v429_v11  ;;  %v110_v36 = vshll.u32 %v70_v16, 8 }
  0x45   :  { %vm73_vm2 = vcmp.gt.s32.totalorder %v72_v12, 0 }
  0x46   :  { %v74_v14 = vsel %vm73_vm2, %v72_v12, 0 }
  0x47   :  { %v76_v15 = vand.u32 31, %v74_v14  ;;  %v75_v17 = vshrl.u32 %v74_v14, 5 }
  0x49   :  { %v77_v18 = vsub.s32 32, %v76_v15  ;;  %v79_v20 = vshll.u32 %v572_v19, %v76_v15  ;;  %v82_v22 = vshll.u32 %v573_v21, %v76_v15  ;;  %v85_v24 = vshll.u32 %v574_v23, %v76_v15 }
  0x4a   :  { %v88_v26 = vshll.u32 %v575_v25, %v76_v15  ;;  %v91_v28 = vshll.u32 %v576_v27, %v76_v15  ;;  %vm94_vm3 = vcmp.lt.s32.totalorder %v75_v17, 1  ;;  %vm97_vm4 = vcmp.lt.s32.totalorder %v75_v17, 4 }
  0x4b   :  { %v78_v29 = vshrl.u32 %v572_v19, %v77_v18  ;;  %v80_v30 = vshrl.u32 %v573_v21, %v77_v18  ;;  %v83_v31 = vshrl.u32 %v574_v23, %v77_v18  ;;  %v86_v32 = vshrl.u32 %v575_v25, %v77_v18 }
  0x4c   :  { %v89_v33 = vshrl.u32 %v576_v27, %v77_v18  ;;  %v92_v35 = vshrl.u32 %v577_v34, %v77_v18  ;;  %vm95_vm5 = vcmp.lt.s32.totalorder %v75_v17, 2  ;;  %vm96_vm6 = vcmp.lt.s32.totalorder %v75_v17, 3 }
  0x4d   :  { %v81_v37 = vor.u32 %v80_v30, %v79_v20  ;;  %v84_v38 = vor.u32 %v83_v31, %v82_v22  ;;  %v87_v39 = vor.u32 %v86_v32, %v85_v24  ;;  %v165_v22 = vlaneseq }
  0x4e   :  { %v90_v40 = vor.u32 %v89_v33, %v88_v26  ;;  %v93_v41 = vor.u32 %v92_v35, %v91_v28 }
  0x4f   :  { %v98_v42 = vsel %vm94_vm3, %v78_v29, %v81_v37  ;;  %v99_v43 = vsel %vm97_vm4, %v87_v39, 2102212464  ;;  %v102_v44 = vsel %vm94_vm3, %v81_v37, %v84_v38  ;;  %v106_v45 = vsel %vm94_vm3, %v84_v38, %v87_v39 }
  0x50   :  { %v100_v46 = vsel %vm96_vm6, %v84_v38, %v99_v43  ;;  %v103_v47 = vsel %vm97_vm4, %v90_v40, 920167782  ;;  %v107_v48 = vsel %vm97_vm4, %v93_v41, 1326507024  ;;  %v166_v26 = vshrl.u32 %v165_v22, 7 }
  0x51   :  { %v104_v49 = vsel %vm96_vm6, %v87_v39, %v103_v47  ;;  %v108_v50 = vsel %vm96_vm6, %v90_v40, %v107_v48  ;;  %v101_v51 = vsel %vm95_vm5, %v98_v42, %v100_v46  ;;  %v578_v22 = vmov 0.0  }
  0x52   :  { %v105_v52 = vsel %vm95_vm5, %v102_v44, %v104_v49  ;;  %v109_v53 = vsel %vm95_vm5, %v106_v45, %v108_v50  ;;  %v117_v58 = vmul.u32 %v110_v36, %v101_v51  ;;  %v167_v28 = vadd.s32 8, %v166_v26  ;;  %450 = vmatprep.subr.mxu1 %v578_v22 }
  0x53   :  { %v617_v54 = vmul.u32.u64.low %v110_v36, %v109_v53  ;;  %v618_v55 = vmul.u32.u64.high %v110_v36, %v109_v53, %v617_v54  ;;  %v620_v56 = vmul.u32.u64.low %v110_v36, %v105_v52  ;;  %v621_v57 = vmul.u32.u64.high %v110_v36, %v105_v52, %v620_v56 }
  0x54   :  { %v195_v31 = vshra.s32 %v167_v28, 1  ;;  %v217_v32 = vshra.s32 %v167_v28, 2  ;;  %v239_v33 = vshra.s32 %v167_v28, 3  ;;  %v194_v34 = vshra.s32 %v166_v26, 1 }
  0x55   :  { %vm119_vm7 = vc.u32 %v618_v55, %v620_v56  ;;  %v120_v59 = vadd.s32 1, %v621_v57  ;;  %v118_v6 = vadd.s32 %v620_v56, %v618_v55  ;;  %v170_v35 = vsub.s32 0, %v166_v26 }
  0x56   :  { %v174_v36 = vsub.s32 4, %v166_v26  ;;  %v216_v10 = vshra.s32 %v166_v26, 2  ;;  %v238_v37 = vshra.s32 %v166_v26, 3  ;;  %v177_v38 = vand.u32 1, %v167_v28 }
  0x57   :  { %v121_v60 = vsel %vm119_vm7, %v120_v59, %v621_v57  ;;  %v188_v39 = vsub.s32 1, %v166_v26  ;;  %v192_v40 = vsub.s32 5, %v166_v26  ;;  %v210_v41 = vsub.s32 2, %v166_v26 }
  0x58   :  { %v122_v61 = vadd.s32 %v121_v60, %v117_v58  ;;  %v197_v43 = vand.u32 1, %v195_v31  ;;  %v219_v44 = vand.u32 1, %v217_v32  ;;  %v176_v45 = vand.u32 1, %v166_v26 }
  0x59   :  { %v241_v48 = vand.u32 1, %v239_v33  ;;  %v196_v49 = vand.u32 1, %v194_v34  ;;  %v218_v51 = vand.u32 1, %v216_v10  ;;  %v240_v52 = vand.u32 1, %v238_v37 }
  0x5a   :  { %v123_v62 = vadd.s32 536870912, %v122_v61  ;;  %v214_v54 = vsub.s32 6, %v166_v26  ;;  %v232_v55 = vsub.s32 3, %v166_v26  ;;  %vm632_vm15 = vcmp.eq.s32.totalorder %v177_v38, 1 }
  0x5b   :  { %v236_v58 = vsub.s32 7, %v166_v26  ;;  %vm636_vm1 = vcmp.eq.s32.totalorder %v176_v45, 1  ;;  %vm199_vm2 = vcmp.eq.s32.totalorder %v197_v43, 1  ;;  %vm221_vm3 = vcmp.eq.s32.totalorder %v219_v44, 1 }
  0x5c   :  { %v124_v63 = vshrl.u32 %v123_v62, 30  ;;  %vm243_vm4 = vcmp.eq.s32.totalorder %v241_v48, 1  ;;  %vm198_vm5 = vcmp.eq.s32.totalorder %v196_v49, 1  ;;  %vm220_vm6 = vcmp.eq.s32.totalorder %v218_v51, 1 }
  0x5d   :  { %vm242_vm7 = vcmp.eq.s32.totalorder %v240_v52, 1 }
  0x5e   :  { %v125_v0 = vshll.u32 %v124_v63, 30  ;;  %v148_v24 = vsub.s32 4, %v124_v63 }
  0x60   :  { %v126_v1 = vsub.s32 %v122_v61, %v125_v0  ;;  %v149_v27 = vsel %vm64_vm9, %v148_v24, %v124_v63 }
  0x61   :  { %v151_v29 = vsel %vm63_vm10, 0, %v149_v27  ;;  %v338_v27 = vld [vmem:[#allocation7] sm:$0xf] }
  0x62   :  { %v128_v2 = vsub.s32 0, %v126_v1  ;;  %v155_v30 = vand.u32 3, %v151_v29 }
  0x64   :  { %v430_v3 = vmin.u32 %v128_v2, %v126_v1  ;;  %vm160_vm11 = vcmp.eq.s32.totalorder %v155_v30, 2  ;;  %vm157_vm12 = vcmp.eq.s32.totalorder %v155_v30, 0  ;;  %vm156_vm13 = vcmp.lt.s32.totalorder %v155_v30, 2 }
  0x66   :  { %v130_v4 = vclz %v430_v3 }
  0x68   :  { %v431_v5 = vadd.s32 4294967294, %v130_v4 }
  0x6a   :  { %vm432_vm8 = vcmp.lt.s32.totalorder %v431_v5, 0 }
  0x6b   :  { %v133_v8 = vsel %vm432_vm8, 0, %v431_v5  ;;  %vm579_vm8 = vmmov 0  }
  0x6c   :  { %v134_v9 = vsub.s32 32, %v133_v8  ;;  %v135_v11 = vshll.u32 %v126_v1, %v133_v8  ;;  %v138_v12 = vsub.s32 4294967266, %v133_v8  ;;  %454 = vmatprep.mubr.msk.f32.mxu1 %vm579_vm8, %v578_v22 }
  0x6e   :  { %v136_v13 = vshrl.u32 %v118_v6, %v134_v9  ;;  %v139_v14 = vadd.s32 127, %v138_v12 }
  0x70   :  { %v137_v15 = vor.u32 %v136_v13, %v135_v11  ;;  %v140_v16 = vshll.u32 %v139_v14, 23 }
  0x72   :  { %v141_v17 = vor.u32 4788187, %v140_v16  ;;  %v144_v18 = vcvt.s32.f32 %v137_v15 }
  0x74   :  { %v142_v19 = vand.u32 2147483647, %v141_v17 }
  0x76   :  { %v145_v20 = vmul.f32 %v144_v18, %v142_v19 }
  0x78   :  { %v146_v21 = vxor.u32 2147483648, %v145_v20 }
  0x7a   :  { %v147_v23 = vsel %vm64_vm9, %v146_v21, %v145_v20  ;;  %v253_v21 = vld [vmem:[#allocation5 + $0x8] sm:$0xff] }
  0x7b   :  { %v150_v25 = vsel %vm63_vm10, %v611_v7, %v147_v23 }
  0x7c   :  { %477 = vcosq.f32 %v150_v25 }
  0x7d   :  { %479 = vsinq.f32 %v150_v25 }
  0x89   :  { %v478_v42 = vpop.eup %477 }
  0x8a   :  { %v480_v46 = vpop.eup %479  ;;  %v161_v47 = vxor.u32 2147483648, %v478_v42 }
  0x8b   :  { %v158_v50 = vxor.u32 2147483648, %v480_v46 }
  0x8c   :  { %v162_v53 = vsel %vm160_vm11, %v161_v47, %v480_v46 }
  0x8d   :  { %v159_v56 = vsel %vm157_vm12, %v478_v42, %v158_v50 }
  0x8e   :  { %v163_v60 = vsel %vm156_vm13, %v159_v56, %v162_v53 }
  0x8f   :  { %v164_v61 = vsel %vm154_vm14, nan, %v163_v60 }
  0x90   :  { %v171_v7 = vrot.slane %v164_v61, %v170_v35  ;;  %v175_v62 = vrot.slane %v164_v61, %v174_v36  ;;  %v189_v63 = vrot.slane %v164_v61, %v188_v39  ;;  %v193_v0 = vrot.slane %v164_v61, %v192_v40 }
  0x91   :  { %v211_v1 = vrot.slane %v164_v61, %v210_v41  ;;  %v215_v2 = vrot.slane %v164_v61, %v214_v54  ;;  %v233_v3 = vrot.slane %v164_v61, %v232_v55  ;;  %v237_v4 = vrot.slane %v164_v61, %v236_v58 }
  0x92   :  { %v185_v5 = vsel %vm632_vm15, %v175_v62, %v171_v7  ;;  %v205_v6 = vsel %vm199_vm2, %v193_v0, %v189_v63  ;;  %v184_v8 = vsel %vm636_vm1, %v175_v62, %v171_v7  ;;  %v204_v9 = vsel %vm198_vm5, %v193_v0, %v189_v63 }
  0x93   :  { %v207_v11 = vmul.f32 %v205_v6, %v185_v5  ;;  %v227_v12 = vsel %vm221_vm3, %v215_v2, %v211_v1  ;;  %v206_v13 = vmul.f32 %v204_v9, %v184_v8  ;;  %v249_v14 = vsel %vm243_vm4, %v237_v4, %v233_v3 }
  0x94   :  { %v226_v15 = vsel %vm220_vm6, %v215_v2, %v211_v1  ;;  %v248_v16 = vsel %vm242_vm7, %v237_v4, %v233_v3 }
  0x95   :  { %v229_v17 = vmul.f32 %v227_v12, %v207_v11  ;;  %v228_v18 = vmul.f32 %v226_v15, %v206_v13 }
  0x97   :  { %v251_v19 = vmul.f32 %v249_v14, %v229_v17  ;;  %v250_v20 = vmul.f32 %v248_v16, %v228_v18 }
  0x99   :  { %443 = vmatprep.subr.mxu0 %v251_v19 }
  0x9a   :  { %444 = vmatpush3.msra.mxu0 %v251_v19 }
  0x9b   :  { %445 = vmatprep.subr.mxu0 %v250_v20 }
  0x9c   :  { %446 = vmatpush3.msra.mxu0 %v250_v20 }
  0x9d   :  { %448 = vmatmul.mubr.msk.f32.vlgmr.msra.gmra.mxu0 %vm254_vm0, %v253_v21 }
 0x15d   :  { %v449_v23 = vpop.f32.mrf.mxu0 }
 0x15e   :  { %v337_v24 = vmul.f32 %v449_v23, %v449_v23 }
 0x15f   :  { %v327_v25 = vpop.f32.mrf.mxu0 }
 0x160   :  { %v336_v26 = vmul.f32 %v327_v25, %v327_v25  ;;  %451 = vmatpush3.msra.mxu1 %v337_v24 }
 0x161   :  { %452 = vmatprep.subr.mxu1 %v578_v22 }
 0x162   :  { %453 = vmatpush3.msra.mxu1 %v336_v26 }
 0x163   :  { %455 = vmatmul.mubr.msk.f32.vlgmr.msra.gmra.mxu1 %vm254_vm0, %v338_v27 }
 0x223   :  { %v408_v28 = vpop.f32.mrf.mxu1 }
 0x224   :  { %412 = vst [vmem:[#allocation8] sm:$0xf] %v408_v28 }
 0x225   :  { %v456_v29 = vpop.f32.mrf.mxu1 }
 0x226   :  { %552 = shalt.err (!%p549_p5)
}
 0x227   :  { %422 = dma.vmem_to_hbm [thread:$0]  %s420_s2, 64, %s657_s3, [#allocation4]  }
 0x228   :  { %565 = dma.done.wait [#allocation4], 64  }
 0x229   :  { %566 = vsyncadd [#allocation4], 4294967232 }
 0x22a   :  { %426 = vsyncpa [#allocation3], 1 }
 0x22b   :  { %427 = vsyncpa [#allocation6], 1 }
 0x22c   :  { %428 = vsyncpa [#allocation4], 1 }

</bundles_post_ra>
